<compile_context>
chip_gen: v5e
topology: v5e:2x2
jax: 0.10.0
libtpu: 0.0.40
codegen_flags: <defaults>
</compile_context>

<pallas_src>
import numpy as np
import jax
import jax.numpy as jnp
from jax import lax
from jax.experimental import pallas as pl
from jax.experimental.pallas import tpu as pltpu


# ----------------------------------------------------------------------------
# Pallas kernel: fused one-hot gather of Dr1[r,c], Dr2[r,c] + block select
# ----------------------------------------------------------------------------
def _rtd_dgm_kernel(r_ref, c_ref, blk_ref, m_ref, out_ref):
    """Gather DX[i0, i1] for P index pairs without materializing DX.

    r_ref, c_ref : (1, P) int32  -- indices folded into the (N, N) blocks
    blk_ref      : (1, P) int32  -- 0: top-left (zero), 1: off-diag (Dr1),
                                    2: bottom-right (min(Dr1, Dr2))
    m_ref        : (2*Np, Np) f32 -- [Dr1_padded ; Dr2_padded] stacked on rows
    out_ref      : (1, P) f32    -- gathered diagram values (lane-dense)
    """
    npad = m_ref.shape[1]                                  # Np (multiple of 8)
    p = r_ref.shape[1]                                     # P (multiple of 128)

    r = r_ref[...]                                         # (1, P)
    c = c_ref[...]
    blk = blk_ref[...]

    rows = lax.broadcasted_iota(jnp.int32, (npad, p), 0)   # (Np, P)
    oh_c = (rows == c).astype(jnp.float32)                 # one-hot columns
    oh_r = (rows == r).astype(jnp.float32)                 # one-hot rows

    # Single fused MXU gather over the stacked [Dr1; Dr2]:
    #   t[rr, q] = M[rr, c[q]]                             -> (2*Np, P)
    t = lax.dot_general(
        m_ref[...], oh_c,
        dimension_numbers=(((1,), (0,)), ((), ())),
        preferred_element_type=jnp.float32)

    # Pick row r[q] from each half with a sublane (XLU) reduction.
    g1 = jnp.sum(oh_r * t[:npad, :], axis=0, keepdims=True)    # Dr1[r, c]
    g2 = jnp.sum(oh_r * t[npad:, :], axis=0, keepdims=True)    # Dr2[r, c]
    g12 = jnp.minimum(g1, g2)                                   # min AFTER gather

    out_ref[...] = jnp.where(blk == 0, jnp.float32(0.0),
                             jnp.where(blk == 2, g12, g1))


def _gather_dgm(r_idx, c_idx, blk, m_cat):
    p = r_idx.shape[1]
    two_np, npad = m_cat.shape
    flops = 2 * two_np * npad * p + 6 * two_np * p
    bytes_accessed = 4 * (m_cat.size + 3 * p + p)
    # rough VMEM need: inputs + one-hots + matmul result + small temps
    vmem_need = 4 * (m_cat.size + 2 * npad * p + 2 * two_np * p + 16 * p)
    return pl.pallas_call(
        _rtd_dgm_kernel,
        out_shape=jax.ShapeDtypeStruct((1, p), jnp.float32),
        in_specs=[
            pl.BlockSpec(memory_space=pltpu.MemorySpace.VMEM),
            pl.BlockSpec(memory_space=pltpu.MemorySpace.VMEM),
            pl.BlockSpec(memory_space=pltpu.MemorySpace.VMEM),
            pl.BlockSpec(memory_space=pltpu.MemorySpace.VMEM),
        ],
        out_specs=pl.BlockSpec(memory_space=pltpu.MemorySpace.VMEM),
        compiler_params=pltpu.CompilerParams(
            vmem_limit_bytes=int(min(64 << 20, max(32 << 20, 2 * vmem_need)))),
        cost_estimate=pl.CostEstimate(
            flops=int(flops), transcendentals=0,
            bytes_accessed=int(bytes_accessed)),
    )(r_idx, c_idx, blk, m_cat)


# ----------------------------------------------------------------------------
# Module-equivalent wrapper
# ----------------------------------------------------------------------------
class RTDDifferentiablePallas:
    """JAX/Pallas port of RTD_differentiable.forward.

    The Rips persistence-pair indices (normally produced on CPU by
    ripser/giotto) must be supplied; everything downstream of them (the
    differentiable gather from the implicit DX block matrix) runs in one
    batched Pallas kernel call.
    """

    def __init__(self, dim=1, card=50, mode='quantile'):
        if mode != 'quantile' and mode != 'median':
            raise ValueError('Only "quantile" or "median" modes are supported')
        self.dim = dim
        self.card = card
        self.mode = mode

    def forward(self, Dr1, Dr2, all_ids):
        if Dr1.shape[0] != Dr2.shape[0]:
            raise ValueError('Point clouds must have same size')
        n = int(Dr1.shape[0])
        npad = ((n + 7) // 8) * 8                     # sublane-aligned N

        # ---- host-side integer index prep (non-differentiable part) ----
        sel_rows, sel_cols, counts = [], [], []
        for ids in all_ids:
            tmp_idx = np.reshape(np.asarray(ids, dtype=np.int64),
                                 [2 * self.card, 2])
            sel = tmp_idx if self.dim > 0 else tmp_idx[1::2, :]
            sel_rows.append(sel[:, 0])
            sel_cols.append(sel[:, 1])
            counts.append(sel.shape[0])

        i0 = np.concatenate(sel_rows)
        i1 = np.concatenate(sel_cols)
        total = int(i0.shape[0])
        p_pad = max(128, ((total + 127) // 128) * 128)  # lane-dense output
        i0 = np.pad(i0, (0, p_pad - total))             # sentinel (0,0) -> block 0
        i1 = np.pad(i1, (0, p_pad - total))

        top0 = i0 < n
        top1 = i1 < n
        r = np.where(top0, i0, i0 - n).astype(np.int32)
        c = np.where(top1, i1, i1 - n).astype(np.int32)
        blk = np.where(top0 & top1, 0,
                       np.where(~top0 & ~top1, 2, 1)).astype(np.int32)

        # ---- stacked, zero-padded [Dr1; Dr2]  (2*Np, Np) ----
        pad = ((0, npad - n), (0, npad - n))
        m_cat = jnp.concatenate(
            [jnp.pad(jnp.asarray(Dr1, jnp.float32), pad),
             jnp.pad(jnp.asarray(Dr2, jnp.float32), pad)], axis=0)

        # ---- single batched kernel call for all homology dimensions ----
        vals = _gather_dgm(jnp.asarray(r)[None, :],
                           jnp.asarray(c)[None, :],
                           jnp.asarray(blk)[None, :],
                           m_cat)[0]                     # (p_pad,)

        all_dgms, off = [], 0
        for cnt in counts:
            v = vals[off:off + cnt]
            off += cnt
            if self.dim > 0:
                dgm = v.reshape(self.card, 2)
            else:
                dgm = jnp.concatenate(
                    [jnp.zeros((self.card, 1), jnp.float32),
                     v.reshape(self.card, 1)], axis=1)
            all_dgms.append(dgm)
        return all_dgms


# ----------------------------------------------------------------------------
# Demo / self-check
# ----------------------------------------------------------------------------
if __name__ == "__main__":
    key = jax.random.PRNGKey(0)
    k1, k2, k3 = jax.random.split(key, 3)

    N = 16          # point-cloud size -> (N, N) distance matrices
    dim = 2         # two homology dimensions -> exercises the batched gather
    card = 50
    P = 2 * card

    # Deterministic "point clouds" -> Euclidean distance matrices (glue, plain JAX).
    X1 = jax.random.normal(k1, (N, 8), dtype=jnp.float32)
    X2 = jax.random.normal(k2, (N, 8), dtype=jnp.float32)

    def pdist(X):
        d2 = jnp.sum((X[:, None, :] - X[None, :, :]) ** 2, axis=-1)
        return jnp.sqrt(jnp.maximum(d2, 0.0))

    Dr1 = pdist(X1)
    Dr2 = pdist(X2)

    # Deterministic synthetic persistence-pair indices (stand-in for Rips()).
    all_ids = []
    for d in range(1, dim + 1):
        ids = jax.random.randint(jax.random.fold_in(k3, d),
                                 (4 * card,), 0, 2 * N, dtype=jnp.int32)
        all_ids.append(np.asarray(ids))

    rtd = RTDDifferentiablePallas(dim=dim, card=card)
    dgms = rtd.forward(Dr1, Dr2, all_ids)
    dgms = [jax.block_until_ready(d) for d in dgms]

    # Pure-JAX reference: explicitly build DX and gather.
    Dr12 = jnp.minimum(Dr1, Dr2)
    Dzz = jnp.zeros((N, N), jnp.float32)
    DX = jnp.concatenate(
        [jnp.concatenate([Dzz, Dr1], axis=1),
         jnp.concatenate([Dr1, Dr12], axis=1)], axis=0)
    for ids, dgm in zip(all_ids, dgms):
        tmp_idx = np.reshape(np.asarray(ids, dtype=np.int64), [P, 2])
        ref = np.asarray(DX[tmp_idx[:, 0], tmp_idx[:, 1]]).reshape(card, 2)
        assert dgm.shape == (card, 2)
        assert np.allclose(np.asarray(dgm), ref, rtol=1e-6, atol=1e-6)

    print("KERNEL_OK")
</pallas_src>

<mosaic_0001>
module attributes {stable_mosaic.version = 11 : i64} {
  func.func @_rtd_dgm_kernel(%arg0: memref<1x256xi32, #tpu.memory_space<vmem>>, %arg1: memref<1x256xi32, #tpu.memory_space<vmem>>, %arg2: memref<1x256xi32, #tpu.memory_space<vmem>>, %arg3: memref<32x16xf32, #tpu.memory_space<vmem>>, %arg4: memref<1x256xf32, #tpu.memory_space<vmem>>) attributes {dimension_semantics = [], scalar_prefetch = 0 : i64, scratch_operands = 0 : i64, tpu.core_type = #tpu.core_type<tc>} {
    %c0 = arith.constant 0 : index
    %c0_0 = arith.constant 0 : index
    %0 = vector.load %arg0[%c0, %c0_0] : memref<1x256xi32, #tpu.memory_space<vmem>>, vector<1x256xi32>
    %c0_1 = arith.constant 0 : index
    %c0_2 = arith.constant 0 : index
    %1 = vector.load %arg1[%c0_1, %c0_2] : memref<1x256xi32, #tpu.memory_space<vmem>>, vector<1x256xi32>
    %c0_3 = arith.constant 0 : index
    %c0_4 = arith.constant 0 : index
    %2 = vector.load %arg2[%c0_3, %c0_4] : memref<1x256xi32, #tpu.memory_space<vmem>>, vector<1x256xi32>
    %3 = tpu.iota {dimensions = array<i32: 0>} : vector<16x256xi32>
    %4 = vector.broadcast %1 : vector<1x256xi32> to vector<16x256xi32>
    %5 = arith.cmpi eq, %3, %4 : vector<16x256xi32>
    %6 = arith.extui %5 : vector<16x256xi1> to vector<16x256xi32>
    %7 = arith.sitofp %6 : vector<16x256xi32> to vector<16x256xf32>
    %8 = vector.broadcast %0 : vector<1x256xi32> to vector<16x256xi32>
    %9 = arith.cmpi eq, %3, %8 : vector<16x256xi32>
    %10 = arith.extui %9 : vector<16x256xi1> to vector<16x256xi32>
    %11 = arith.sitofp %10 : vector<16x256xi32> to vector<16x256xf32>
    %c0_5 = arith.constant 0 : index
    %c0_6 = arith.constant 0 : index
    %12 = vector.load %arg3[%c0_5, %c0_6] : memref<32x16xf32, #tpu.memory_space<vmem>>, vector<32x16xf32>
    %cst = arith.constant dense<0.000000e+00> : vector<32x256xf32>
    %13 = tpu.matmul %12, %7, %cst {dimension_numbers = #tpu.dot_dimension_numbers<[1], [0], [0], [1], [0, 0, 1, 1], [], []>} : vector<32x16xf32>, vector<16x256xf32>, vector<32x256xf32> -> vector<32x256xf32>
    %14 = vector.extract_strided_slice %13 {offsets = [0, 0], sizes = [16, 256], strides = [1, 1]} : vector<32x256xf32> to vector<16x256xf32>
    %15 = arith.mulf %11, %14 : vector<16x256xf32>
    %cst_7 = arith.constant dense<0.000000e+00> : vector<256xf32>
    %16 = vector.multi_reduction <add>, %15, %cst_7 [0] : vector<16x256xf32> to vector<256xf32>
    %17 = vector.shape_cast %16 : vector<256xf32> to vector<1x256xf32>
    %18 = vector.extract_strided_slice %13 {offsets = [16, 0], sizes = [16, 256], strides = [1, 1]} : vector<32x256xf32> to vector<16x256xf32>
    %19 = arith.mulf %11, %18 : vector<16x256xf32>
    %cst_8 = arith.constant dense<0.000000e+00> : vector<256xf32>
    %20 = vector.multi_reduction <add>, %19, %cst_8 [0] : vector<16x256xf32> to vector<256xf32>
    %21 = vector.shape_cast %20 : vector<256xf32> to vector<1x256xf32>
    %22 = arith.minimumf %17, %21 : vector<1x256xf32>
    %c0_i32 = arith.constant 0 : i32
    %23 = vector.broadcast %c0_i32 : i32 to vector<1x256xi32>
    %24 = arith.cmpi eq, %2, %23 : vector<1x256xi32>
    %c2_i32 = arith.constant 2 : i32
    %25 = vector.broadcast %c2_i32 : i32 to vector<1x256xi32>
    %26 = arith.cmpi eq, %2, %25 : vector<1x256xi32>
    %27 = arith.select %26, %22, %17 : vector<1x256xi1>, vector<1x256xf32>
    %cst_9 = arith.constant 0.000000e+00 : f32
    %28 = vector.broadcast %cst_9 : f32 to vector<1x256xf32>
    %29 = arith.select %24, %28, %27 : vector<1x256xi1>, vector<1x256xf32>
    %c0_10 = arith.constant 0 : index
    %c0_11 = arith.constant 0 : index
    %30 = vector.load %arg4[%c0_10, %c0_11] : memref<1x256xf32, #tpu.memory_space<vmem>>, vector<1x256xf32>
    tpu.vector_store %arg4[%c0_10, %c0_11], %29 {strides = array<i32>} : memref<1x256xf32, #tpu.memory_space<vmem>>, vector<1x256xf32>,
    return
  }
}

</mosaic_0001>

<bundles_post_ra>
// kernel: tpu_custom_call.1
= control target key start
LH: loop header
LB: loop body
LE: loop exit
PB: predicated region body
PF: predicated region fallthrough
CT: control target
= control target key end

     0   :  { %v21_v1 = vlaneseq  ;;  %s308_s0 = inlined_call_operand.vmem [shape: s32[1,256], index: 0, kind: input, shape index: {}]   ;;  %s309_s1 = inlined_call_operand.vmem [shape: s32[1,256], index: 1, kind: input, shape index: {}]   ;;  %s310_s2 = inlined_call_operand.vmem [shape: s32[1,256], index: 2, kind: input, shape index: {}]   ;;  %s311_s3 = inlined_call_operand.vmem [shape: f32[32,16], index: 3, kind: input, shape index: {}]   ;;  %s312_s4 = inlined_call_operand.hbm [shape: f32[1,256], index: 4, kind: output, shape index: {}]  }
   0x1   :  { %v19_v0 = vld [vmem:[%s309_s1] sm:$0x3] }
   0x2   :  { %v22_v2 = vshrl.u32 %v21_v1, 7  ;;  %v24_v3 = vperm.slane %v19_v0, 0  ;;  %v25_v4 = vperm.slane %v19_v0, 1 }
   0x3   :  { %9 = vsyncpa [#allocation3], 0  ;;  %v254_v6 = vmov 1.0   ;;  %v52_v7 = vld [vmem:[%s311_s3] sm:$0xff]  ;;  %vm56_vm4 = vcmask 130048   ;;  %v54_v8 = vld [vmem:[%s311_s3 + $0x10] sm:$0xff] }
   0x4   :  { %v23_v5 = vadd.s32 8, %v22_v2  ;;  %vm26_vm2 = vcmp.eq.s32.totalorder %v22_v2, %v24_v3  ;;  %vm27_vm3 = vcmp.eq.s32.totalorder %v22_v2, %v25_v4  ;;  %v53_v9 = vld [vmem:[%s311_s3 + $0x8] sm:$0xff]  ;;  %v55_v10 = vld [vmem:[%s311_s3 + $0x18] sm:$0xff]  ;;  %v18_v11 = vld [vmem:[%s308_s0] sm:$0x3]  ;;  %v255_v16 = vmov 0.0  }
   0x5   :  { %v38_v12 = vperm.slane %v18_v11, 0  ;;  %v39_v14 = vperm.slane %v18_v11, 1  ;;  %v20_v62 = vld [vmem:[%s310_s2] sm:$0x3]  ;;  %vm170_vm9 = vcmask 1040384   ;;  %s256_s26 = smov [#allocation2]  }
   0x6   :  { %vm28_vm0 = vcmp.eq.s32.totalorder %v23_v5, %v24_v3  ;;  %vm29_vm1 = vcmp.eq.s32.totalorder %v23_v5, %v25_v4  ;;  %vm166_vm10 = vcmp.eq.s32.totalorder %v20_v62, 2  ;;  %s190_s27 = sshll.u32 %s256_s26, 4  ;;  %s192_s30 = sshll.u32 %s312_s4, 4  ;;  %vm165_vm11 = vcmp.eq.s32.totalorder %v20_v62, 0  ;;  %s191_s27 = int_to_ptr.vmem [resolvable:$true] %s190_s27  ;;  %s193_s30 = int_to_ptr.hbm [resolvable:$true] %s192_s30 }
   0x7   :  { %209 = vmatpush.msk.msra.mxu0 %vm28_vm0, %v254_v6  ;;  %221 = vmatpush.msk.msra.mxu2 %vm28_vm0, %v254_v6  ;;  %vm40_vm5 = vcmp.eq.s32.totalorder %v22_v2, %v38_v12  ;;  %vm42_vm6 = vcmp.eq.s32.totalorder %v23_v5, %v38_v12  ;;  %vm41_vm7 = vcmp.eq.s32.totalorder %v22_v2, %v39_v14  ;;  %vm182_vm12 = vcmp.lt.s32.totalorder %v21_v1, 256 }
   0x8   :  { %215 = vmatpush.msk.msra.mxu1 %vm29_vm1, %v254_v6  ;;  %223 = vmatpush.msk.msra.mxu3 %vm29_vm1, %v254_v6  ;;  %v205_v17 = vsel %vm40_vm5, 1.0, %v255_v16  ;;  %vm43_vm8 = vcmp.eq.s32.totalorder %v23_v5, %v39_v14  ;;  %v207_v19 = vsel %vm42_vm6, 1.0, %v255_v16  ;;  %v206_v21 = vsel %vm41_vm7, 1.0, %v255_v16 }
   0x9   :  { %210 = vmatpush.msk.msra.mxu0 %vm26_vm2, %v254_v6  ;;  %222 = vmatpush.msk.msra.mxu2 %vm26_vm2, %v254_v6  ;;  %v208_v23 = vsel %vm43_vm8, 1.0, %v255_v16 }
   0xa   :  { %216 = vmatpush.msk.msra.mxu1 %vm27_vm3, %v254_v6  ;;  %224 = vmatpush.msk.msra.mxu3 %vm27_vm3, %v254_v6 }
   0xb   :  { %211 = vmatmul.msk.f32.vlgmr.msra.gmra.mxu0 %vm56_vm4, %v52_v7  ;;  %213 = vmatmul.msk.f32.vlgmr.msra.gmra.mxu2 %vm56_vm4, %v54_v8 }
   0xc   :  { %217 = vmatmul.msk.f32.vlgmr.msra.gmra.mxu1 %vm56_vm4, %v52_v7  ;;  %219 = vmatmul.msk.f32.vlgmr.msra.gmra.mxu3 %vm56_vm4, %v54_v8 }
  0x13   :  { %212 = vmatmul.msk.f32.gmra.mxu0 %vm56_vm4, %v53_v9  ;;  %214 = vmatmul.msk.f32.gmra.mxu2 %vm56_vm4, %v55_v10 }
  0x14   :  { %218 = vmatmul.msk.f32.gmra.mxu1 %vm56_vm4, %v53_v9  ;;  %220 = vmatmul.msk.f32.gmra.mxu3 %vm56_vm4, %v55_v10 }
  0x88   :  { %v86_v13 = vpop.f32.mrf.mxu0 }
  0x89   :  { %v115_v15 = vpop.f32.mrf.mxu1  ;;  %v127_v20 = vmul.f32 %v205_v17, %v86_v13 }
  0x8a   :  { %v128_v27 = vmul.f32 %v206_v21, %v115_v15 }
  0x8e   :  { %v92_v18 = vpop.f32.mrf.mxu2 }
  0x8f   :  { %v121_v22 = vpop.f32.mrf.mxu3  ;;  %v145_v34 = vmul.f32 %v205_v17, %v92_v18 }
  0x90   :  { %v89_v24 = vpop.f32.mrf.mxu0  ;;  %v146_v37 = vmul.f32 %v206_v21, %v121_v22 }
  0x91   :  { %v129_v25 = vmul.f32 %v207_v19, %v89_v24  ;;  %v118_v26 = vpop.f32.mrf.mxu1 }
  0x92   :  { %v130_v28 = vmul.f32 %v208_v23, %v118_v26 }
  0x93   :  { %v131_v29 = vadd.f32 %v129_v25, %v127_v20 }
  0x94   :  { %v138_v30 = vadd.f32 %v130_v28, %v128_v27 }
  0x95   :  { %v132_v31 = vrot.slane %v131_v29, 4 }
  0x96   :  { %v139_v32 = vrot.slane %v138_v30, 4  ;;  %v95_v33 = vpop.f32.mrf.mxu2 }
  0x97   :  { %v147_v35 = vmul.f32 %v207_v19, %v95_v33  ;;  %v124_v36 = vpop.f32.mrf.mxu3  ;;  %v133_v38 = vadd.f32 %v132_v31, %v131_v29 }
  0x98   :  { %v140_v39 = vadd.f32 %v139_v32, %v138_v30  ;;  %v148_v40 = vmul.f32 %v208_v23, %v124_v36 }
  0x99   :  { %v149_v41 = vadd.f32 %v147_v35, %v145_v34  ;;  %v134_v45 = vrot.slane %v133_v38, 2 }
  0x9a   :  { %v141_v42 = vrot.slane %v140_v39, 2  ;;  %v156_v43 = vadd.f32 %v148_v40, %v146_v37 }
  0x9b   :  { %v150_v44 = vrot.slane %v149_v41, 4  ;;  %v135_v51 = vadd.f32 %v134_v45, %v133_v38 }
  0x9c   :  { %v142_v46 = vadd.f32 %v141_v42, %v140_v39  ;;  %v157_v47 = vrot.slane %v156_v43, 4 }
  0x9d   :  { %v151_v48 = vadd.f32 %v150_v44, %v149_v41  ;;  %v136_v57 = vrot.slane %v135_v51, 1 }
  0x9e   :  { %v158_v49 = vadd.f32 %v157_v47, %v156_v43  ;;  %v143_v52 = vrot.slane %v142_v46, 1 }
  0x9f   :  { %v152_v50 = vrot.slane %v151_v48, 2  ;;  %v137_v63 = vadd.f32 %v136_v57, %v135_v51 }
  0xa0   :  { %v159_v53 = vrot.slane %v158_v49, 2  ;;  %v144_v58 = vadd.f32 %v143_v52, %v142_v46 }
  0xa1   :  { %v153_v54 = vadd.f32 %v152_v50, %v151_v48 }
  0xa2   :  { %v160_v55 = vadd.f32 %v159_v53, %v158_v49  ;;  %v175_v0 = vrot.slane %v144_v58, 7 }
  0xa3   :  { %v154_v56 = vrot.slane %v153_v54, 1 }
  0xa4   :  { %v161_v59 = vrot.slane %v160_v55, 1  ;;  %v176_v6 = vsel %vm170_vm9, %v137_v63, %v175_v0 }
  0xa5   :  { %v155_v60 = vadd.f32 %v154_v56, %v153_v54 }
  0xa6   :  { %v162_v61 = vadd.f32 %v161_v59, %v160_v55 }
  0xa7   :  { %v163_v3 = vmin.f32 %v137_v63, %v155_v60 }
  0xa8   :  { %v164_v2 = vmin.f32 %v144_v58, %v162_v61 }
  0xaa   :  { %v169_v4 = vrot.slane %v164_v2, 7 }
  0xac   :  { %v171_v5 = vsel %vm170_vm9, %v163_v3, %v169_v4 }
  0xad   :  { %v178_v7 = vsel %vm166_vm10, %v171_v5, %v176_v6 }
  0xae   :  { %v179_v8 = vsel %vm165_vm11, 0.0, %v178_v7 }
  0xaf   :  { %184 = vst.msk [vmem:[#allocation2] sm:$0x3] %vm182_vm12, %v179_v8 }
  0xb0   :  { %195 = dma.vmem_to_hbm [thread:$0]  %s191_s27, 32, %s193_s30, [#allocation3]  }
  0xb1   :  { %252 = dma.done.wait [#allocation3], 32  }
  0xb2   :  { %253 = vsyncadd [#allocation3], 4294967264 }
  0xb3   :  { %200 = vsyncpa [#allocation3], 1 }

</bundles_post_ra>
